<compile_context>
chip_gen: v7x
topology: tpu7x:2x2x1
jax: 0.10.0
libtpu: 0.0.40
codegen_flags: <defaults>
</compile_context>

<pallas_src>
import functools

import jax
import jax.numpy as jnp
import numpy as np
from jax import lax
from jax.experimental import pallas as pl
from jax.experimental.pallas import tpu as pltpu


def _l2_normalize(x):
    # matches torch.nn.functional.normalize(x, dim=1, eps=1e-12):
    #   x / max(||x||, 1e-12)  ==  x * rsqrt(max(||x||^2, 1e-24))
    ss = jnp.sum(x * x, axis=1, keepdims=True)
    return x * lax.rsqrt(jnp.maximum(ss, 1e-24))


def _vmem_limit_bytes():
    try:
        cap = int(pltpu.get_tpu_info().vmem_capacity_bytes)
    except Exception:
        cap = 64 * 1024 * 1024  # conservative (v7x per-TC VMEM)
    # leave ~20% headroom for the compiler, never ask for more than ~100 MiB
    return min(int(cap * 0.8), 100 * 1024 * 1024)


# ----------------------------------------------------------------------------
# Single-block kernel: whole (N, N) sim tile resident. Right regime for small /
# moderate N (the shapes this module is used with).
# ----------------------------------------------------------------------------
def _dual_contrast_kernel(h1_ref, h2_ref, out_ref, *, inv_tau, n, shift):
    h1 = h1_ref[...].astype(jnp.float32)
    h2 = h2_ref[...].astype(jnp.float32)

    # Fold 1/tau into the anchor so the N^2 sim tile never sees a divide/mul.
    h1n = _l2_normalize(h1) * inv_tau
    h2n = _l2_normalize(h2)

    # diag_sum = sum_i sim[i,i] = sum_i (h1n[i] . h2n[i]) — O(N*D), no masks,
    # no (N,N) iota/where temporaries. Computed before the matmul so sim's
    # live range ends at the exp (lets Mosaic alias sim / e).
    diag_sum = jnp.sum(
        jnp.sum(h1n * h2n, axis=1, keepdims=True), axis=0, keepdims=True
    )  # (1, 1)

    # One MXU matmul, contracting the last axis of both operands (no explicit
    # transpose of the (N, D) sample tile).
    sim = lax.dot_general(
        h1n, h2n,
        dimension_numbers=(((1,), (1,)), ((), ())),
        preferred_element_type=jnp.float32,
    )  # (N, N)

    if shift != 0.0:          # static: only emitted for very small tau
        sim = sim - shift

    # One EUP exp pass serves both branches (sim for (h2,h1) is just sim.T).
    e = jnp.exp(sim)
    row_lse_sum = jnp.sum(
        jnp.log(jnp.sum(e, axis=1, keepdims=True)), axis=0, keepdims=True
    )  # (1, 1) : sum_i log sum_j exp(sim[i,j])  (shifted)
    col_lse_sum = jnp.sum(
        jnp.log(jnp.sum(e, axis=0, keepdims=True)), axis=1, keepdims=True
    )  # (1, 1) : sum_j log sum_i exp(sim[i,j])  (shifted)

    total = (2.0 * diag_sum
             - (row_lse_sum + float(n) * shift)
             - (col_lse_sum + float(n) * shift))
    out_ref[...] = -total * (0.5 / float(n))


# ----------------------------------------------------------------------------
# Row-tiled kernel for large N: residency bounded by ~2*TM*N*4B.
# h2n is cached once in VMEM scratch; col-denominators, row-lse and diag are
# accumulated online across row tiles (init at tile 0, finalize at last tile).
# ----------------------------------------------------------------------------
def _dual_contrast_tiled_kernel(h1_ref, h2_ref, out_ref,
                                h2n_sc, col_den_sc, diag_sc, rowlse_sc,
                                *, inv_tau, n, tm, shift):
    i = pl.program_id(0)

    @pl.when(i == 0)
    def _init():
        h2 = h2_ref[...].astype(jnp.float32)
        h2n_sc[...] = _l2_normalize(h2)
        col_den_sc[...] = jnp.zeros_like(col_den_sc)
        diag_sc[...] = jnp.zeros_like(diag_sc)
        rowlse_sc[...] = jnp.zeros_like(rowlse_sc)

    h1 = h1_ref[...].astype(jnp.float32)
    h1n = _l2_normalize(h1) * inv_tau          # (TM, D)
    h2n = h2n_sc[...]                          # (N, D)

    # diag contribution of this row tile: rows [i*TM, (i+1)*TM) of h2n.
    row_start = pl.multiple_of(i * tm, 8)
    diag_sc[...] += jnp.sum(
        jnp.sum(h1n * h2n_sc[pl.ds(row_start, tm), :], axis=1, keepdims=True),
        axis=0, keepdims=True,
    )

    sim = lax.dot_general(
        h1n, h2n,
        dimension_numbers=(((1,), (1,)), ((), ())),
        preferred_element_type=jnp.float32,
    )  # (TM, N)
    if shift != 0.0:
        sim = sim - shift

    e = jnp.exp(sim)
    # Accumulate column denominators and per-tile row-lse while e is hot.
    col_den_sc[...] += jnp.sum(e, axis=0, keepdims=True)                 # (1, N)
    rowlse_sc[...] += jnp.sum(
        jnp.log(jnp.sum(e, axis=1, keepdims=True)), axis=0, keepdims=True
    )                                                                    # (1, 1)

    @pl.when(i == pl.num_programs(0) - 1)
    def _finalize():
        col_lse_sum = jnp.sum(
            jnp.log(col_den_sc[...]), axis=1, keepdims=True
        )  # (1, 1)
        total = (2.0 * diag_sc[...]
                 - (rowlse_sc[...] + float(n) * shift)
                 - (col_lse_sum + float(n) * shift))
        out_ref[...] = -total * (0.5 / float(n))


# ----------------------------------------------------------------------------
# Wrapper
# ----------------------------------------------------------------------------
def dual_branch_contrast_l2l(h1, h2, tau=0.2, row_tile=512):
    """DualBranchContrast(InfoNCE(tau), mode='L2L', intraview_negs=False)(h1=h1, h2=h2)."""
    assert h1.shape == h2.shape
    n, d = h1.shape
    inv_tau = 1.0 / float(tau)
    # exp argument is bounded by |sim| <= 1/tau; shift only when needed (static).
    shift = inv_tau if inv_tau > 60.0 else 0.0
    vmem_limit = _vmem_limit_bytes()

    use_tiled = (row_tile % 8 == 0) and (n % row_tile == 0) and (n // row_tile >= 2)

    if use_tiled:
        kernel = functools.partial(
            _dual_contrast_tiled_kernel, inv_tau=inv_tau, n=n, tm=row_tile, shift=shift
        )
        out = pl.pallas_call(
            kernel,
            out_shape=jax.ShapeDtypeStruct((1, 1), jnp.float32),
            grid_spec=pltpu.PrefetchScalarGridSpec(
                num_scalar_prefetch=0,
                grid=(n // row_tile,),
                in_specs=[
                    pl.BlockSpec((row_tile, d), lambda i: (i, 0)),  # h1 row tile
                    pl.BlockSpec((n, d), lambda i: (0, 0)),         # h2 resident
                ],
                out_specs=pl.BlockSpec((1, 1), lambda i: (0, 0)),
                scratch_shapes=[
                    pltpu.VMEM((n, d), jnp.float32),   # h2n cache
                    pltpu.VMEM((1, n), jnp.float32),   # column denominators
                    pltpu.VMEM((1, 1), jnp.float32),   # diag accumulator
                    pltpu.VMEM((1, 1), jnp.float32),   # row-lse accumulator
                ],
            ),
            compiler_params=pltpu.CompilerParams(
                dimension_semantics=("arbitrary",),
                vmem_limit_bytes=vmem_limit,
            ),
        )(h1, h2)
    else:
        kernel = functools.partial(
            _dual_contrast_kernel, inv_tau=inv_tau, n=n, shift=shift
        )
        vmem_spec = pl.BlockSpec(memory_space=pltpu.MemorySpace.VMEM)
        out = pl.pallas_call(
            kernel,
            out_shape=jax.ShapeDtypeStruct((1, 1), jnp.float32),
            in_specs=[vmem_spec, vmem_spec],
            out_specs=vmem_spec,
            compiler_params=pltpu.CompilerParams(vmem_limit_bytes=vmem_limit),
        )(h1, h2)
    return out[0, 0]


def _reference(h1, h2, tau=0.2):
    # Faithful re-implementation of the original torch module's math
    # (explicit eye masks, two separate InfoNCE evaluations).
    def norm(x):
        return x / jnp.maximum(jnp.linalg.norm(x, axis=1, keepdims=True), 1e-12)

    def info_nce(a, s, pos, neg):
        sim = norm(a) @ norm(s).T / tau
        exp_sim = jnp.exp(sim) * (pos + neg)
        log_prob = sim - jnp.log(jnp.sum(exp_sim, axis=1, keepdims=True))
        loss = jnp.sum(log_prob * pos, axis=1) / jnp.sum(pos, axis=1)
        return -jnp.mean(loss)

    n = h1.shape[0]
    pos = jnp.eye(n, dtype=jnp.float32)
    neg = 1.0 - pos
    return (info_nce(h1, h2, pos, neg) + info_nce(h2, h1, pos, neg)) * 0.5


if __name__ == "__main__":
    key = jax.random.PRNGKey(0)
    k1, k2, k3, k4 = jax.random.split(key, 4)

    # Small shape consistent with the module (8 nodes, hidden=32): single-block path.
    N, D = 8, 32
    h1 = jax.random.normal(k1, (N, D), dtype=jnp.float32)
    h2 = jax.random.normal(k2, (N, D), dtype=jnp.float32)
    loss = jax.block_until_ready(dual_branch_contrast_l2l(h1, h2, tau=0.2))
    ref = jax.block_until_ready(_reference(h1, h2, tau=0.2))
    np.testing.assert_allclose(np.asarray(loss), np.asarray(ref),
                               rtol=1e-4, atol=1e-5)

    # Larger shape exercising the row-tiled online-accumulation path.
    N2, D2 = 256, 32
    g1 = jax.random.normal(k3, (N2, D2), dtype=jnp.float32)
    g2 = jax.random.normal(k4, (N2, D2), dtype=jnp.float32)
    loss2 = jax.block_until_ready(
        dual_branch_contrast_l2l(g1, g2, tau=0.2, row_tile=128))
    ref2 = jax.block_until_ready(_reference(g1, g2, tau=0.2))
    np.testing.assert_allclose(np.asarray(loss2), np.asarray(ref2),
                               rtol=1e-4, atol=1e-5)

    print("KERNEL_OK")
</pallas_src>

<mosaic_0001>
module attributes {stable_mosaic.version = 11 : i64} {
  func.func @_dual_contrast_kernel(%arg0: memref<8x32xf32, #tpu.memory_space<vmem>>, %arg1: memref<8x32xf32, #tpu.memory_space<vmem>>, %arg2: memref<1x1xf32, #tpu.memory_space<vmem>>) attributes {dimension_semantics = [], scalar_prefetch = 0 : i64, scratch_operands = 0 : i64, tpu.core_type = #tpu.core_type<tc>} {
    %c0 = arith.constant 0 : index
    %c0_0 = arith.constant 0 : index
    %0 = vector.load %arg0[%c0, %c0_0] : memref<8x32xf32, #tpu.memory_space<vmem>>, vector<8x32xf32>
    %c0_1 = arith.constant 0 : index
    %c0_2 = arith.constant 0 : index
    %1 = vector.load %arg1[%c0_1, %c0_2] : memref<8x32xf32, #tpu.memory_space<vmem>>, vector<8x32xf32>
    %2 = arith.mulf %0, %0 : vector<8x32xf32>
    %cst = arith.constant dense<0.000000e+00> : vector<8xf32>
    %3 = vector.multi_reduction <add>, %2, %cst [1] : vector<8x32xf32> to vector<8xf32>
    %4 = vector.shape_cast %3 : vector<8xf32> to vector<8x1xf32>
    %cst_3 = arith.constant 1.000000e-24 : f32
    %5 = vector.broadcast %cst_3 : f32 to vector<8x1xf32>
    %6 = arith.maximumf %4, %5 : vector<8x1xf32>
    %7 = math.rsqrt %6 : vector<8x1xf32>
    %8 = vector.broadcast %7 : vector<8x1xf32> to vector<8x32xf32>
    %9 = arith.mulf %0, %8 : vector<8x32xf32>
    %cst_4 = arith.constant 5.000000e+00 : f32
    %10 = vector.broadcast %cst_4 : f32 to vector<8x32xf32>
    %11 = arith.mulf %9, %10 : vector<8x32xf32>
    %12 = arith.mulf %1, %1 : vector<8x32xf32>
    %cst_5 = arith.constant dense<0.000000e+00> : vector<8xf32>
    %13 = vector.multi_reduction <add>, %12, %cst_5 [1] : vector<8x32xf32> to vector<8xf32>
    %14 = vector.shape_cast %13 : vector<8xf32> to vector<8x1xf32>
    %cst_6 = arith.constant 1.000000e-24 : f32
    %15 = vector.broadcast %cst_6 : f32 to vector<8x1xf32>
    %16 = arith.maximumf %14, %15 : vector<8x1xf32>
    %17 = math.rsqrt %16 : vector<8x1xf32>
    %18 = vector.broadcast %17 : vector<8x1xf32> to vector<8x32xf32>
    %19 = arith.mulf %1, %18 : vector<8x32xf32>
    %20 = arith.mulf %11, %19 : vector<8x32xf32>
    %cst_7 = arith.constant dense<0.000000e+00> : vector<8xf32>
    %21 = vector.multi_reduction <add>, %20, %cst_7 [1] : vector<8x32xf32> to vector<8xf32>
    %22 = vector.shape_cast %21 : vector<8xf32> to vector<8x1xf32>
    %cst_8 = arith.constant dense<0.000000e+00> : vector<1xf32>
    %23 = vector.multi_reduction <add>, %22, %cst_8 [0] : vector<8x1xf32> to vector<1xf32>
    %24 = vector.shape_cast %23 : vector<1xf32> to vector<1x1xf32>
    %cst_9 = arith.constant dense<0.000000e+00> : vector<8x8xf32>
    %25 = tpu.matmul %11, %19, %cst_9 {dimension_numbers = #tpu.dot_dimension_numbers<[1], [1], [0], [0], [0, 0, 1, 0], [], []>} : vector<8x32xf32>, vector<8x32xf32>, vector<8x8xf32> -> vector<8x8xf32>
    %26 = math.exp %25 : vector<8x8xf32>
    %cst_10 = arith.constant dense<0.000000e+00> : vector<8xf32>
    %27 = vector.multi_reduction <add>, %26, %cst_10 [1] : vector<8x8xf32> to vector<8xf32>
    %28 = vector.shape_cast %27 : vector<8xf32> to vector<8x1xf32>
    %29 = math.log %28 : vector<8x1xf32>
    %cst_11 = arith.constant dense<0.000000e+00> : vector<1xf32>
    %30 = vector.multi_reduction <add>, %29, %cst_11 [0] : vector<8x1xf32> to vector<1xf32>
    %31 = vector.shape_cast %30 : vector<1xf32> to vector<1x1xf32>
    %cst_12 = arith.constant dense<0.000000e+00> : vector<8xf32>
    %32 = vector.multi_reduction <add>, %26, %cst_12 [0] : vector<8x8xf32> to vector<8xf32>
    %33 = vector.shape_cast %32 : vector<8xf32> to vector<1x8xf32>
    %34 = math.log %33 : vector<1x8xf32>
    %cst_13 = arith.constant dense<0.000000e+00> : vector<1xf32>
    %35 = vector.multi_reduction <add>, %34, %cst_13 [1] : vector<1x8xf32> to vector<1xf32>
    %36 = vector.shape_cast %35 : vector<1xf32> to vector<1x1xf32>
    %cst_14 = arith.constant 2.000000e+00 : f32
    %37 = vector.broadcast %cst_14 : f32 to vector<1x1xf32>
    %38 = arith.mulf %37, %24 : vector<1x1xf32>
    %cst_15 = arith.constant 0.000000e+00 : f32
    %39 = vector.broadcast %cst_15 : f32 to vector<1x1xf32>
    %40 = arith.addf %31, %39 : vector<1x1xf32>
    %41 = arith.subf %38, %40 : vector<1x1xf32>
    %cst_16 = arith.constant 0.000000e+00 : f32
    %42 = vector.broadcast %cst_16 : f32 to vector<1x1xf32>
    %43 = arith.addf %36, %42 : vector<1x1xf32>
    %44 = arith.subf %41, %43 : vector<1x1xf32>
    %cst_17 = arith.constant 0.000000e+00 : f32
    %45 = vector.broadcast %cst_17 : f32 to vector<1x1xf32>
    %46 = arith.subf %45, %44 : vector<1x1xf32>
    %cst_18 = arith.constant 6.250000e-02 : f32
    %47 = vector.broadcast %cst_18 : f32 to vector<1x1xf32>
    %48 = arith.mulf %46, %47 : vector<1x1xf32>
    %c0_19 = arith.constant 0 : index
    %c0_20 = arith.constant 0 : index
    %49 = vector.load %arg2[%c0_19, %c0_20] : memref<1x1xf32, #tpu.memory_space<vmem>>, vector<1x1xf32>
    tpu.vector_store %arg2[%c0_19, %c0_20], %48 {strides = array<i32>} : memref<1x1xf32, #tpu.memory_space<vmem>>, vector<1x1xf32>,
    return
  }
}

</mosaic_0001>

<bundles_post_ra>
// kernel: tpu_custom_call.1
= control target key start
LH: loop header
LB: loop body
LE: loop exit
PB: predicated region body
PF: predicated region fallthrough
CT: control target
= control target key end

     0   :  { %7 = vsyncpa [#allocation3], 0  ;;  %s347_s0 = inlined_call_operand.hbm [shape: f32[8,32], index: 0, kind: input, shape index: {}]   ;;  %s348_s1 = inlined_call_operand.hbm [shape: f32[8,32], index: 1, kind: input, shape index: {}]   ;;  %s349_s2 = inlined_call_operand.hbm [shape: f32[1,1], index: 2, kind: output, shape index: {}]  }
   0x1   :  { %8 = vsyncpa [#allocation6], 0 }
   0x2   :  { %9 = vsyncpa [#allocation4], 0  ;;  %s286_s9 = smov [#allocation2]   ;;  %s287_s11 = smov [#allocation5]  }
   0x3   :  { %s16_s10 = sshll.u32 %s286_s9, 4  ;;  %s26_s12 = sshll.u32 %s287_s11, 4  ;;  %s17_s10 = int_to_ptr.vmem [resolvable:$true] %s16_s10  ;;  %s27_s12 = int_to_ptr.vmem [resolvable:$true] %s26_s12 }
   0x4   :  { %s214_s15 = scalar_lea.hbm %s347_s0, 128 }
   0x5   :  { %p215_p0 = scmp.ne.s32.totalorder %s347_s0, %s214_s15  ;;  %p218_p1 = scmp.lt.u32.totalorder %s214_s15, %s347_s0 }
   0x7   :  { %p220_p2 = pnand %p218_p1, %p215_p0 }
   0x9   :  { %223 = shalt.err (!%p220_p2)
}
   0xa   :  { %s224_s20 = scalar_lea.vmem %s17_s10, 128  ;;  %p229_p4 = scmp.lt.s32.totalorder %s17_s10, %s17_s10 }
   0xb   :  { %p225_p3 = scmp.ne.s32.totalorder %s17_s10, %s224_s20  ;;  %p230_p5 = scmp.lt.s32.totalorder %s224_s20, %s224_s20 }
   0xd   :  { %p231_p6 = por %p230_p5, %p229_p4 }
   0xf   :  { %p232_p7 = pnand %p231_p6, %p225_p3 }
  0x11   :  { %235 = shalt.err (!%p232_p7)
}
  0x12   :  { %19 = dma.hbm_to_vmem [thread:$0]  %s347_s0, 128, %s17_s10, [#allocation3]  }
  0x13   :  { %s236_s25 = scalar_lea.hbm %s348_s1, 128 }
  0x14   :  { %p237_p8 = scmp.ne.s32.totalorder %s348_s1, %s236_s25  ;;  %p240_p9 = scmp.lt.u32.totalorder %s236_s25, %s348_s1 }
  0x16   :  { %p242_p10 = pnand %p240_p9, %p237_p8 }
  0x18   :  { %245 = shalt.err (!%p242_p10)
}
  0x19   :  { %s246_s30 = scalar_lea.vmem %s27_s12, 128  ;;  %p251_p12 = scmp.lt.s32.totalorder %s27_s12, %s27_s12 }
  0x1a   :  { %p247_p11 = scmp.ne.s32.totalorder %s27_s12, %s246_s30  ;;  %p252_p13 = scmp.lt.s32.totalorder %s246_s30, %s246_s30 }
  0x1c   :  { %p253_p0 = por %p252_p13, %p251_p12 }
  0x1e   :  { %p254_p1 = pnand %p253_p0, %p247_p11 }
  0x20   :  { %257 = shalt.err (!%p254_p1)
}
  0x21   :  { %29 = dma.hbm_to_vmem [thread:$0]  %s348_s1, 128, %s27_s12, [#allocation6]  }
  0x22   :  { %280 = dma.done.wait [#allocation3], 128  }
  0x23   :  { %281 = vsyncadd [#allocation3], 4294967168 }
  0x24   :  { %282 = dma.done.wait [#allocation6], 128  }
  0x25   :  { %283 = vsyncadd [#allocation6], 4294967168  ;;  %v37_v0 = vld [vmem:[#allocation5] sm:$0xff]  ;;  %vm39_vm0 = vcmask 261120   ;;  %v36_v1 = vld [vmem:[#allocation2] sm:$0xff]  ;;  %v288_v6 = vmov 0.0  }
  0x26   :  { %v47_v2 = vmul.f32 %v37_v0, %v37_v0  ;;  %v38_v3 = vmul.f32 %v36_v1, %v36_v1  ;;  %194 = vmatprep.subr.mxu0 %v288_v6  ;;  %vm289_vm1 = vmmov 0   ;;  %vm142_vm2 = vcmask 64512   ;;  %s290_s1 = smov [#allocation7]  }
  0x27   :  { %196 = vmatprep.mubr.msk.f32.mxu0 %vm289_vm1, %v288_v6  ;;  %s180_s4 = sshll.u32 %s290_s1, 4  ;;  %vm172_vm3 = vcmask 0   ;;  %s181_s4 = int_to_ptr.vmem [resolvable:$true] %s180_s4 }
  0x28   :  { %v48_v4 = vsel %vm39_vm0, %v47_v2, 0.0  ;;  %v40_v5 = vsel %vm39_vm0, %v38_v3, 0.0  ;;  %s258_s5 = scalar_lea.vmem %s181_s4, 16  ;;  %s262_s6 = scalar_lea.vmem %s181_s4, 32 }
  0x29   :  { %49 = vadd.xlane.f32.xlu0 %v48_v4  ;;  %p259_p2 = scmp.ne.s32.totalorder %s181_s4, %s258_s5  ;;  %p263_p3 = scmp.lt.s32.totalorder %s181_s4, %s181_s4 }
  0x2a   :  { %p264_p4 = scmp.lt.s32.totalorder %s262_s6, %s258_s5 }
  0x2c   :  { %p265_p5 = por %p264_p4, %p263_p3 }
  0x2d   :  { %41 = vadd.xlane.f32.xlu0 %v40_v5 }
  0x2e   :  { %p266_p6 = pnand %p265_p5, %p259_p2 }
  0xb6   :  { %v50_v7 = vpop.xlane.xlu0 %49 }
  0xb7   :  { %v51_v8 = vmax.f32 %v50_v7, 1e-24 }
  0xb9   :  { %204 = vrsqrt.f32 %v51_v8 }
  0xba   :  { %v42_v9 = vpop.xlane.xlu0 %41 }
  0xbb   :  { %v43_v10 = vmax.f32 %v42_v9, 1e-24 }
  0xbd   :  { %206 = vrsqrt.f32 %v43_v10 }
  0xc3   :  { %v205_v11 = vpop.eup %204 }
  0xc4   :  { %v53_v12 = vmul.f32 %v205_v11, %v37_v0 }
  0xc6   :  { %195 = vmatpush3.xpose.msk.msra.mxu0 %vm39_vm0, %v53_v12 }
  0xc7   :  { %v207_v13 = vpop.eup %206 }
  0xc8   :  { %v45_v14 = vmul.f32 %v207_v13, %v36_v1 }
  0xca   :  { %v46_v15 = vmul.f32 5.0, %v45_v14 }
  0xcc   :  { %197 = vmatmul.mubr.msk.f32.vlgmr.msra.gmra.mrb[0].mxu0 %vm39_vm0, %v46_v15  ;;  %v54_v16 = vmul.f32 %v53_v12, %v46_v15 }
  0xce   :  { %v55_v24 = vsel %vm39_vm0, %v54_v16, 0.0 }
 0x19f   :  { %v136_v17 = vpop.f32.mrb[0].mxu0 }
 0x1a0   :  { %v140_v18 = vmul.f32 1.442695, %v136_v17  ;;  %v198_v19 = vpop.f32.mrb[1].mxu0 }
 0x1a2   :  { %208 = vpow2.f32 %v140_v18 }
 0x1ac   :  { %v209_v20 = vpop.eup %208 }
 0x1ad   :  { %v143_v21 = vsel %vm142_vm2, %v209_v20, 0.0 }
 0x1ae   :  { %144 = vadd.xlane.f32.xlu1 %v143_v21  ;;  %v154_v22 = vrot.slane %v143_v21, 4 }
 0x1b0   :  { %v155_v23 = vadd.f32 %v154_v22, %v143_v21 }
 0x1b2   :  { %v156_v25 = vrot.slane %v155_v23, 2  ;;  %56 = vadd.xlane.f32.xlu1 %v55_v24 }
 0x1b4   :  { %v157_v26 = vadd.f32 %v156_v25, %v155_v23 }
 0x1b6   :  { %v158_v27 = vrot.slane %v157_v26, 1 }
 0x1b8   :  { %v159_v28 = vadd.f32 %v158_v27, %v157_v26 }
 0x1ba   :  { %210 = vlog2.f32 %v159_v28 }
 0x1c4   :  { %v211_v29 = vpop.eup %210 }
 0x1c5   :  { %v161_v30 = vmul.f32 0.6931472, %v211_v29 }
 0x1c7   :  { %v162_v31 = vsel %vm142_vm2, %v161_v30, 0.0 }
 0x1c8   :  { %163 = vadd.xlane.f32.xlu0 %v162_v31 }
 0x23b   :  { %v145_v32 = vpop.xlane.xlu1 %144 }
 0x23c   :  { %212 = vlog2.f32 %v145_v32 }
 0x23f   :  { %v57_v33 = vpop.xlane.xlu1 %56 }
 0x240   :  { %v58_v34 = vrot.slane %v57_v33, 4 }
 0x242   :  { %v59_v35 = vadd.f32 %v58_v34, %v57_v33 }
 0x244   :  { %v60_v36 = vrot.slane %v59_v35, 2 }
 0x246   :  { %v213_v37 = vpop.eup %212  ;;  %v61_v39 = vadd.f32 %v60_v36, %v59_v35 }
 0x247   :  { %v147_v38 = vmul.f32 0.6931472, %v213_v37 }
 0x248   :  { %v62_v42 = vrot.slane %v61_v39, 1 }
 0x249   :  { %v148_v40 = vrot.slane %v147_v38, 4 }
 0x24a   :  { %v63_v44 = vadd.f32 %v62_v42, %v61_v39 }
 0x24b   :  { %v149_v41 = vadd.f32 %v148_v40, %v147_v38 }
 0x24c   :  { %v165_v48 = vmul.f32 2.0, %v63_v44 }
 0x24d   :  { %v150_v43 = vrot.slane %v149_v41, 2 }
 0x24f   :  { %v151_v45 = vadd.f32 %v150_v43, %v149_v41 }
 0x251   :  { %v152_v46 = vrot.slane %v151_v45, 1 }
 0x253   :  { %v153_v47 = vadd.f32 %v152_v46, %v151_v45 }
 0x255   :  { %v164_v49 = vpop.xlane.xlu0 %163  ;;  %v167_v50 = vsub.f32 %v165_v48, %v153_v47 }
 0x257   :  { %v169_v51 = vsub.f32 %v167_v50, %v164_v49 }
 0x259   :  { %v170_v52 = vsub.f32 0.0, %v169_v51 }
 0x25b   :  { %v171_v53 = vmul.f32 0.0625, %v170_v52 }
 0x25d   :  { %173 = vst.msk [vmem:[#allocation7] sm:$0x1] %vm172_vm3, %v171_v53 }
 0x25e   :  { %269 = shalt.err (!%p266_p6)
}
 0x25f   :  { %s270_s9 = scalar_lea.hbm %s349_s2, 16 }
 0x260   :  { %p271_p7 = scmp.ne.s32.totalorder %s349_s2, %s270_s9  ;;  %p274_p8 = scmp.lt.u32.totalorder %s270_s9, %s349_s2 }
 0x262   :  { %p276_p9 = pnand %p274_p8, %p271_p7 }
 0x264   :  { %279 = shalt.err (!%p276_p9)
}
 0x265   :  { %183 = dma.vmem_to_hbm [thread:$0]  %s181_s4, 16, %s349_s2, [#allocation4]  }
 0x266   :  { %284 = dma.done.wait [#allocation4], 16  }
 0x267   :  { %285 = vsyncadd [#allocation4], 4294967280 }
 0x268   :  { %187 = vsyncpa [#allocation3], 1 }
 0x269   :  { %188 = vsyncpa [#allocation6], 1 }
 0x26a   :  { %189 = vsyncpa [#allocation4], 1 }

</bundles_post_ra>
